<compile_context>
chip_gen: v7x
topology: tpu7x:2x2x1
jax: 0.10.0
libtpu: 0.0.40
codegen_flags: <defaults>
</compile_context>

<pallas_src>
import functools

import jax
import jax.numpy as jnp
from jax.experimental import pallas as pl
from jax.experimental.pallas import tpu as pltpu

D_IN = 28 * 28                     # 784
D1, D2, D_OUT = 300, 100, 10       # logical feature dims (PyTorch cfg=[300,100])
D1P, D2P, DOP = 384, 128, 128      # padded to multiples of 128 lanes


def _round_up(x, m):
    return (x + m - 1) // m * m


def _mlp_kernel(x_ref, w1_ref, b1_ref, w2_ref, b2_ref, w3_ref, b3_ref, o_ref):
    # ip1 + ReLU: bf16 operands on the MXU, f32 accumulation & elementwise.
    h1 = jnp.dot(x_ref[...], w1_ref[...], preferred_element_type=jnp.float32)
    h1 = jnp.maximum(h1 + b1_ref[...], 0.0)
    # ip2 + ReLU
    h2 = jnp.dot(h1.astype(jnp.bfloat16), w2_ref[...],
                 preferred_element_type=jnp.float32)
    h2 = jnp.maximum(h2 + b2_ref[...], 0.0)
    # ip3 (logits, no activation) -- lane-dense (TILE_B, 128) unmasked store.
    out = jnp.dot(h2.astype(jnp.bfloat16), w3_ref[...],
                  preferred_element_type=jnp.float32)
    o_ref[...] = (out + b3_ref[...]).astype(o_ref.dtype)


def _pad2d(a, rows, cols):
    return jnp.pad(a, ((0, rows - a.shape[0]), (0, cols - a.shape[1])))


@functools.partial(jax.jit, static_argnames=("tile_b",))
def _forward_impl(x, params, tile_b):
    B = x.shape[0]
    x2d = x.reshape(B, D_IN)

    # Pad the batch to a multiple of the tile so every grid step is full.
    B_pad = _round_up(B, tile_b)
    if B_pad != B:
        x2d = jnp.pad(x2d, ((0, B_pad - B), (0, 0)))
    x_bf = x2d.astype(jnp.bfloat16)

    # Pad feature dims to 128-lane multiples; zero bias padding keeps the
    # extra columns exactly zero through ReLU, so the math is unchanged.
    w1 = _pad2d(params["w1"], D_IN, D1P).astype(jnp.bfloat16)
    w2 = _pad2d(params["w2"], D1P, D2P).astype(jnp.bfloat16)
    w3 = _pad2d(params["w3"], D2P, DOP).astype(jnp.bfloat16)
    b1 = _pad2d(params["b1"], 1, D1P).astype(jnp.float32)
    b2 = _pad2d(params["b2"], 1, D2P).astype(jnp.float32)
    b3 = _pad2d(params["b3"], 1, DOP).astype(jnp.float32)

    n_tiles = B_pad // tile_b

    weight_bytes = ((D_IN * D1P + D1P * D2P + D2P * DOP) * 2   # bf16 weights
                    + (D1P + D2P + DOP) * 4)                   # f32 biases
    vmem_bytes = (2 * tile_b * D_IN * 2       # double-buffered bf16 x tile
                  + 2 * weight_bytes          # weights/biases (conservative x2)
                  + 2 * tile_b * DOP * 4      # double-buffered f32 out tile
                  + tile_b * (D1P + D2P) * 4  # h1/h2 intermediates
                  + (4 << 20))                # headroom
    vmem_limit = int(min(max(vmem_bytes, 16 << 20), 64 << 20))

    cost = pl.CostEstimate(
        flops=2 * B_pad * (D_IN * D1P + D1P * D2P + D2P * DOP),
        transcendentals=0,
        bytes_accessed=B_pad * D_IN * 2 + weight_bytes + B_pad * DOP * 4,
    )

    out_padded = pl.pallas_call(
        _mlp_kernel,
        out_shape=jax.ShapeDtypeStruct((B_pad, DOP), jnp.float32),
        grid=(n_tiles,),
        in_specs=[
            pl.BlockSpec((tile_b, D_IN), lambda i: (i, 0)),   # x tile (pipelined)
            pl.BlockSpec((D_IN, D1P), lambda i: (0, 0)),      # W1 (resident)
            pl.BlockSpec((1, D1P), lambda i: (0, 0)),         # b1
            pl.BlockSpec((D1P, D2P), lambda i: (0, 0)),       # W2
            pl.BlockSpec((1, D2P), lambda i: (0, 0)),         # b2
            pl.BlockSpec((D2P, DOP), lambda i: (0, 0)),       # W3
            pl.BlockSpec((1, DOP), lambda i: (0, 0)),         # b3
        ],
        out_specs=pl.BlockSpec((tile_b, DOP), lambda i: (i, 0)),
        compiler_params=pltpu.CompilerParams(
            dimension_semantics=("parallel",),   # shard batch tiles across TCs (v7x)
            vmem_limit_bytes=vmem_limit,
        ),
        cost_estimate=cost,
    )(x_bf, w1, b1, w2, b2, w3, b3)

    # Slice padded rows/lanes back to the logical (B, 10) logits.
    return out_padded[:B, :D_OUT]


def lenet_300_100_forward(x, params, tile_b=None):
    """x: (B, 1, 28, 28) or (B, 784) float32. params: dict of weights/biases."""
    B = x.shape[0]
    if tile_b is None:
        # >=256 rows per tile when the batch allows it (keeps the MXU fed and
        # amortizes per-grid-step overhead); fits VMEM on v5e/v6e/v7x.
        tile_b = min(256, _round_up(B, 8))
    return _forward_impl(x, params, tile_b)


def init_params(key, cfg=(300, 100), bias_flag=True):
    """Deterministic synthetic parameters (shapes match the nn.Linear layers)."""
    k1, k2, k3, k4, k5, k6 = jax.random.split(key, 6)
    d_in, d1, d2, d_out = D_IN, cfg[0], cfg[1], 10

    def lin_init(kw, kb, fan_in, fan_out):
        bound = 1.0 / jnp.sqrt(jnp.float32(fan_in))
        w = jax.random.uniform(kw, (fan_in, fan_out), jnp.float32, -bound, bound)
        if bias_flag:
            b = jax.random.uniform(kb, (1, fan_out), jnp.float32, -bound, bound)
        else:
            b = jnp.zeros((1, fan_out), jnp.float32)
        return w, b

    w1, b1 = lin_init(k1, k2, d_in, d1)
    w2, b2 = lin_init(k3, k4, d1, d2)
    w3, b3 = lin_init(k5, k6, d2, d_out)
    return dict(w1=w1, b1=b1, w2=w2, b2=b2, w3=w3, b3=b3)


def _reference_forward(x, p):
    """Pure-JAX reference with the same bf16-operand / f32-accumulate numerics."""
    B = x.shape[0]
    h = x.reshape(B, D_IN).astype(jnp.bfloat16)
    h = jnp.maximum(
        jnp.dot(h, p["w1"].astype(jnp.bfloat16),
                preferred_element_type=jnp.float32) + p["b1"], 0.0)
    h = jnp.maximum(
        jnp.dot(h.astype(jnp.bfloat16), p["w2"].astype(jnp.bfloat16),
                preferred_element_type=jnp.float32) + p["b2"], 0.0)
    return jnp.dot(h.astype(jnp.bfloat16), p["w3"].astype(jnp.bfloat16),
                   preferred_element_type=jnp.float32) + p["b3"]


if __name__ == "__main__":
    key = jax.random.PRNGKey(0)
    k_x, k_p = jax.random.split(key)

    # Small demo batch; NCHW input as the PyTorch module expects before .view().
    B = 8
    x = jax.random.normal(k_x, (B, 1, 28, 28), dtype=jnp.float32)
    params = init_params(k_p, cfg=(300, 100), bias_flag=True)

    out = lenet_300_100_forward(x, params)
    out = jax.block_until_ready(out)

    ref = _reference_forward(x, params)
    assert out.shape == (B, 10)
    assert jnp.allclose(out, ref, atol=2e-2, rtol=2e-2), (
        f"max abs diff {jnp.max(jnp.abs(out - ref))}")

    print("KERNEL_OK")
</pallas_src>

<mosaic_0001>
module attributes {stable_mosaic.version = 11 : i64} {
  func.func @_mlp_kernel(%arg0: i32, %arg1: memref<8x784xbf16, #tpu.memory_space<vmem>>, %arg2: memref<784x384xbf16, #tpu.memory_space<vmem>>, %arg3: memref<1x384xf32, #tpu.memory_space<vmem>>, %arg4: memref<384x128xbf16, #tpu.memory_space<vmem>>, %arg5: memref<1x128xf32, #tpu.memory_space<vmem>>, %arg6: memref<128x128xbf16, #tpu.memory_space<vmem>>, %arg7: memref<1x128xf32, #tpu.memory_space<vmem>>, %arg8: memref<8x128xf32, #tpu.memory_space<vmem>>) attributes {dimension_semantics = [#tpu.dimension_semantics<parallel>], iteration_bounds = array<i64: 1>, scalar_prefetch = 0 : i64, scratch_operands = 0 : i64, tpu.core_type = #tpu.core_type<tc>, window_params = [{transform_indices = @transform_0, window_bounds = array<i64: 8, 784>}, {pipeline_mode = #tpu.pipeline_mode<synchronous>, transform_indices = @transform_1, window_bounds = array<i64: 784, 384>}, {pipeline_mode = #tpu.pipeline_mode<synchronous>, transform_indices = @transform_2, window_bounds = array<i64: 1, 384>}, {pipeline_mode = #tpu.pipeline_mode<synchronous>, transform_indices = @transform_3, window_bounds = array<i64: 384, 128>}, {pipeline_mode = #tpu.pipeline_mode<synchronous>, transform_indices = @transform_4, window_bounds = array<i64: 1, 128>}, {pipeline_mode = #tpu.pipeline_mode<synchronous>, transform_indices = @transform_5, window_bounds = array<i64: 128, 128>}, {pipeline_mode = #tpu.pipeline_mode<synchronous>, transform_indices = @transform_6, window_bounds = array<i64: 1, 128>}, {transform_indices = @transform_7, window_bounds = array<i64: 8, 128>}]} {
    %c0 = arith.constant 0 : index
    %c0_0 = arith.constant 0 : index
    %0 = vector.load %arg1[%c0, %c0_0] : memref<8x784xbf16, #tpu.memory_space<vmem>>, vector<8x784xbf16>
    %c0_1 = arith.constant 0 : index
    %c0_2 = arith.constant 0 : index
    %1 = vector.load %arg2[%c0_1, %c0_2] : memref<784x384xbf16, #tpu.memory_space<vmem>>, vector<784x384xbf16>
    %cst = arith.constant dense<0.000000e+00> : vector<8x384xf32>
    %2 = tpu.matmul %0, %1, %cst {dimension_numbers = #tpu.dot_dimension_numbers<[1], [0], [0], [1], [0, 0, 1, 1], [], []>} : vector<8x784xbf16>, vector<784x384xbf16>, vector<8x384xf32> -> vector<8x384xf32>
    %c0_3 = arith.constant 0 : index
    %c0_4 = arith.constant 0 : index
    %3 = vector.load %arg3[%c0_3, %c0_4] : memref<1x384xf32, #tpu.memory_space<vmem>>, vector<1x384xf32>
    %4 = vector.broadcast %3 : vector<1x384xf32> to vector<8x384xf32>
    %5 = arith.addf %2, %4 : vector<8x384xf32>
    %cst_5 = arith.constant 0.000000e+00 : f32
    %6 = vector.broadcast %cst_5 : f32 to vector<8x384xf32>
    %7 = arith.maximumf %5, %6 : vector<8x384xf32>
    %8 = arith.truncf %7 : vector<8x384xf32> to vector<8x384xbf16>
    %c0_6 = arith.constant 0 : index
    %c0_7 = arith.constant 0 : index
    %9 = vector.load %arg4[%c0_6, %c0_7] : memref<384x128xbf16, #tpu.memory_space<vmem>>, vector<384x128xbf16>
    %cst_8 = arith.constant dense<0.000000e+00> : vector<8x128xf32>
    %10 = tpu.matmul %8, %9, %cst_8 {dimension_numbers = #tpu.dot_dimension_numbers<[1], [0], [0], [1], [0, 0, 1, 1], [], []>} : vector<8x384xbf16>, vector<384x128xbf16>, vector<8x128xf32> -> vector<8x128xf32>
    %c0_9 = arith.constant 0 : index
    %c0_10 = arith.constant 0 : index
    %11 = vector.load %arg5[%c0_9, %c0_10] : memref<1x128xf32, #tpu.memory_space<vmem>>, vector<1x128xf32>
    %12 = vector.broadcast %11 : vector<1x128xf32> to vector<8x128xf32>
    %13 = arith.addf %10, %12 : vector<8x128xf32>
    %cst_11 = arith.constant 0.000000e+00 : f32
    %14 = vector.broadcast %cst_11 : f32 to vector<8x128xf32>
    %15 = arith.maximumf %13, %14 : vector<8x128xf32>
    %16 = arith.truncf %15 : vector<8x128xf32> to vector<8x128xbf16>
    %c0_12 = arith.constant 0 : index
    %c0_13 = arith.constant 0 : index
    %17 = vector.load %arg6[%c0_12, %c0_13] : memref<128x128xbf16, #tpu.memory_space<vmem>>, vector<128x128xbf16>
    %cst_14 = arith.constant dense<0.000000e+00> : vector<8x128xf32>
    %18 = tpu.matmul %16, %17, %cst_14 {dimension_numbers = #tpu.dot_dimension_numbers<[1], [0], [0], [1], [0, 0, 1, 1], [], []>} : vector<8x128xbf16>, vector<128x128xbf16>, vector<8x128xf32> -> vector<8x128xf32>
    %c0_15 = arith.constant 0 : index
    %c0_16 = arith.constant 0 : index
    %19 = vector.load %arg7[%c0_15, %c0_16] : memref<1x128xf32, #tpu.memory_space<vmem>>, vector<1x128xf32>
    %20 = vector.broadcast %19 : vector<1x128xf32> to vector<8x128xf32>
    %21 = arith.addf %18, %20 : vector<8x128xf32>
    %c0_17 = arith.constant 0 : index
    %c0_18 = arith.constant 0 : index
    %22 = vector.load %arg8[%c0_17, %c0_18] : memref<8x128xf32, #tpu.memory_space<vmem>>, vector<8x128xf32>
    tpu.vector_store %arg8[%c0_17, %c0_18], %21 {strides = array<i32>} : memref<8x128xf32, #tpu.memory_space<vmem>>, vector<8x128xf32>,
    return
  }
  func.func @transform_0(%arg0: i32) -> (i32, i32) {
    %c0_i32 = arith.constant 0 : i32
    %c0_i32_0 = arith.constant 0 : i32
    return %arg0, %c0_i32 : i32, i32
  }
  func.func @transform_1(%arg0: i32) -> (i32, i32) {
    %c0_i32 = arith.constant 0 : i32
    %c0_i32_0 = arith.constant 0 : i32
    %c0_i32_1 = arith.constant 0 : i32
    return %c0_i32, %c0_i32_0 : i32, i32
  }
  func.func @transform_2(%arg0: i32) -> (i32, i32) {
    %c0_i32 = arith.constant 0 : i32
    %c0_i32_0 = arith.constant 0 : i32
    %c0_i32_1 = arith.constant 0 : i32
    return %c0_i32, %c0_i32_0 : i32, i32
  }
  func.func @transform_3(%arg0: i32) -> (i32, i32) {
    %c0_i32 = arith.constant 0 : i32
    %c0_i32_0 = arith.constant 0 : i32
    %c0_i32_1 = arith.constant 0 : i32
    return %c0_i32, %c0_i32_0 : i32, i32
  }
  func.func @transform_4(%arg0: i32) -> (i32, i32) {
    %c0_i32 = arith.constant 0 : i32
    %c0_i32_0 = arith.constant 0 : i32
    %c0_i32_1 = arith.constant 0 : i32
    return %c0_i32, %c0_i32_0 : i32, i32
  }
  func.func @transform_5(%arg0: i32) -> (i32, i32) {
    %c0_i32 = arith.constant 0 : i32
    %c0_i32_0 = arith.constant 0 : i32
    %c0_i32_1 = arith.constant 0 : i32
    return %c0_i32, %c0_i32_0 : i32, i32
  }
  func.func @transform_6(%arg0: i32) -> (i32, i32) {
    %c0_i32 = arith.constant 0 : i32
    %c0_i32_0 = arith.constant 0 : i32
    %c0_i32_1 = arith.constant 0 : i32
    return %c0_i32, %c0_i32_0 : i32, i32
  }
  func.func @transform_7(%arg0: i32) -> (i32, i32) {
    %c0_i32 = arith.constant 0 : i32
    %c0_i32_0 = arith.constant 0 : i32
    return %arg0, %c0_i32 : i32, i32
  }
}

</mosaic_0001>

<bundles_post_ra>
// kernel: _forward_impl.1
= control target key start
LH: loop header
LB: loop body
LE: loop exit
PB: predicated region body
PF: predicated region fallthrough
CT: control target
= control target key end

     0   :  { %vm1053_vm0 = vcmask 130048   ;;  %vm2416_vm1 = vmmov 0   ;;  %s3072_s0 = inlined_call_operand.vmem [shape: bf16[8,784], index: 0, kind: input, shape index: {}]   ;;  %s3073_s1 = inlined_call_operand.vmem [shape: bf16[784,384], index: 1, kind: input, shape index: {}]   ;;  %s3074_s2 = inlined_call_operand.vmem [shape: f32[1,384], index: 2, kind: input, shape index: {}]   ;;  %s3075_s3 = inlined_call_operand.vmem [shape: bf16[384,128], index: 3, kind: input, shape index: {}]   ;;  %s3076_s4 = inlined_call_operand.vmem [shape: f32[1,128], index: 4, kind: input, shape index: {}]   ;;  %s3077_s5 = inlined_call_operand.vmem [shape: bf16[128,128], index: 5, kind: input, shape index: {}]   ;;  %s3078_s6 = inlined_call_operand.vmem [shape: f32[1,128], index: 6, kind: input, shape index: {}]   ;;  %s3079_s7 = inlined_call_operand.hbm [shape: f32[8,128], index: 7, kind: output, shape index: {}]  }
   0x1   :  { %v2156_v0 = vld [vmem:[%s3073_s1 + $0x4] ss:$12 sps:$4 sm:$0xff]   ;;  %v2158_v1 = vld [vmem:[%s3073_s1] ss:$12 sps:$4 sm:$0xff]   ;;  %v2159_v2 = vld [vmem:[%s3073_s1 + $0x1c] ss:$12 sps:$4 sm:$0xff]  }
   0x2   :  { %1057 = vmatprep.subr.bf16.mxu0 %v2156_v0  ;;  %v2161_v3 = vld [vmem:[%s3073_s1 + $0x18] ss:$12 sps:$4 sm:$0xff]   ;;  %v2162_v4 = vld [vmem:[%s3073_s1 + $0x34] ss:$12 sps:$4 sm:$0xff]   ;;  %v2164_v5 = vld [vmem:[%s3073_s1 + $0x30] ss:$12 sps:$4 sm:$0xff]  }
   0x3   :  { %1058 = vmatpush1.bf16.msra.mxu0 %v2158_v1  ;;  %v2165_v6 = vld [vmem:[%s3073_s1 + $0x4c] ss:$12 sps:$4 sm:$0xff]   ;;  %v2167_v7 = vld [vmem:[%s3073_s1 + $0x48] ss:$12 sps:$4 sm:$0xff]   ;;  %v2168_v8 = vld [vmem:[%s3073_s1 + $0x64] ss:$12 sps:$4 sm:$0xff]  }
   0x4   :  { %1059 = vmatprep.subr.bf16.mxu0 %v2159_v2  ;;  %v2170_v9 = vld [vmem:[%s3073_s1 + $0x60] ss:$12 sps:$4 sm:$0xff]   ;;  %v2171_v10 = vld [vmem:[%s3073_s1 + $0x7c] ss:$12 sps:$4 sm:$0xff]   ;;  %v2173_v11 = vld [vmem:[%s3073_s1 + $0x78] ss:$12 sps:$4 sm:$0xff]  }
   0x5   :  { %v2174_v12 = vld [vmem:[%s3073_s1 + $0x94] ss:$12 sps:$4 sm:$0xff]   ;;  %v2176_v15 = vld [vmem:[%s3073_s1 + $0x90] ss:$12 sps:$4 sm:$0xff]   ;;  %v2177_v16 = vld [vmem:[%s3073_s1 + $0xac] ss:$12 sps:$4 sm:$0xff]  }
   0x6   :  { %v2501_v13 = vld [vmem:[%s3072_s0] sm:$0xff]  ;;  %v2212_v17 = vld [vmem:[%s3073_s1 + $0xc8] ss:$12 sps:$4 sm:$0xff]   ;;  %v2227_v29 = vld [vmem:[%s3073_s1 + $0x110] ss:$12 sps:$4 sm:$0xff]  }
   0x7   :  { %1060 = vmatpush1.bf16.msra.mxu0 %v2161_v3  ;;  %v1795_v14 = vcombine.high %v2501_v13, %v2501_v13  ;;  %v2213_v18 = vld [vmem:[%s3073_s1 + $0x8] ss:$12 sps:$4 sm:$0xff]   ;;  %v2180_v20 = vld [vmem:[%s3073_s1 + $0xc4] ss:$12 sps:$4 sm:$0xff]   ;;  %1984 = vmatprep.subr.bf16.mxu1 %v2212_v17  ;;  %v2217_v21 = vld [vmem:[%s3073_s1 + $0xe0] ss:$12 sps:$4 sm:$0xff]   ;;  %v1794_v51 = vcombine.low %v2501_v13, %v2501_v13 }
   0x8   :  { %1061 = vmatprep.subr.bf16.mxu0 %v2162_v4  ;;  %v2179_v19 = vld [vmem:[%s3073_s1 + $0xa8] ss:$12 sps:$4 sm:$0xff]   ;;  %1985 = vmatpush3.bf16.msra.mxu1 %v2213_v18  ;;  %v2218_v22 = vld [vmem:[%s3073_s1 + $0x20] ss:$12 sps:$4 sm:$0xff]   ;;  %v2222_v25 = vld [vmem:[%s3073_s1 + $0xf8] ss:$12 sps:$4 sm:$0xff]  }
   0x9   :  { %1089 = vmatprep.mubr.bf16.mxu0 %v1795_v14  ;;  %1253 = vmatprep.mubr.bf16.mxu1 %v1795_v14  ;;  %v2182_v23 = vld [vmem:[%s3073_s1 + $0xc0] ss:$12 sps:$4 sm:$0xff]   ;;  %v2183_v24 = vld [vmem:[%s3073_s1 + $0xdc] ss:$12 sps:$4 sm:$0xff]   ;;  %v2223_v26 = vld [vmem:[%s3073_s1 + $0x38] ss:$12 sps:$4 sm:$0xff]  }
   0xa   :  { %1986 = vmatprep.subr.bf16.mxu1 %v2217_v21  ;;  %v2185_v27 = vld [vmem:[%s3073_s1 + $0xd8] ss:$12 sps:$4 sm:$0xff]   ;;  %v2186_v28 = vld [vmem:[%s3073_s1 + $0xf4] ss:$12 sps:$4 sm:$0xff]   ;;  %v2228_v30 = vld [vmem:[%s3073_s1 + $0x50] ss:$12 sps:$4 sm:$0xff]  }
   0xb   :  { %1062 = vmatpush1.bf16.msra.mxu0 %v2164_v5  ;;  %v2232_v31 = vld [vmem:[%s3073_s1 + $0x128] ss:$12 sps:$4 sm:$0xff]   ;;  %v2188_v32 = vld [vmem:[%s3073_s1 + $0xf0] ss:$12 sps:$4 sm:$0xff]   ;;  %v2189_v33 = vld [vmem:[%s3073_s1 + $0x10c] ss:$12 sps:$4 sm:$0xff]  }
   0xc   :  { %1063 = vmatprep.subr.bf16.mxu0 %v2165_v6  ;;  %1987 = vmatpush3.bf16.msra.mxu1 %v2218_v22  ;;  %v2233_v34 = vld [vmem:[%s3073_s1 + $0x68] ss:$12 sps:$4 sm:$0xff]   ;;  %v2237_v35 = vld [vmem:[%s3073_s1 + $0x140] ss:$12 sps:$4 sm:$0xff]   ;;  %v2192_v37 = vld [vmem:[%s3073_s1 + $0x124] ss:$12 sps:$4 sm:$0xff]  }
   0xd   :  { %1988 = vmatprep.subr.bf16.mxu1 %v2222_v25  ;;  %v2191_v36 = vld [vmem:[%s3073_s1 + $0x108] ss:$12 sps:$4 sm:$0xff]   ;;  %v2238_v38 = vld [vmem:[%s3073_s1 + $0x80] ss:$12 sps:$4 sm:$0xff]   ;;  %v2242_v39 = vld [vmem:[%s3073_s1 + $0x158] ss:$12 sps:$4 sm:$0xff]  }
   0xe   :  { %v2194_v40 = vld [vmem:[%s3073_s1 + $0x120] ss:$12 sps:$4 sm:$0xff]   ;;  %v2195_v41 = vld [vmem:[%s3073_s1 + $0x13c] ss:$12 sps:$4 sm:$0xff]   ;;  %v2243_v42 = vld [vmem:[%s3073_s1 + $0x98] ss:$12 sps:$4 sm:$0xff]  }
   0xf   :  { %1064 = vmatpush1.bf16.msra.mxu0 %v2167_v7  ;;  %v2247_v43 = vld [vmem:[%s3073_s1 + $0x170] ss:$12 sps:$4 sm:$0xff]   ;;  %v2197_v44 = vld [vmem:[%s3073_s1 + $0x138] ss:$12 sps:$4 sm:$0xff]   ;;  %v2198_v45 = vld [vmem:[%s3073_s1 + $0x154] ss:$12 sps:$4 sm:$0xff]  }
  0x10   :  { %1065 = vmatprep.subr.bf16.mxu0 %v2168_v8  ;;  %1989 = vmatpush3.bf16.msra.mxu1 %v2223_v26  ;;  %v2248_v46 = vld [vmem:[%s3073_s1 + $0xb0] ss:$12 sps:$4 sm:$0xff]   ;;  %v2252_v47 = vld [vmem:[%s3073_s1 + $0x248] ss:$12 sps:$4 sm:$0xff]   ;;  %v2201_v49 = vld [vmem:[%s3073_s1 + $0x16c] ss:$12 sps:$4 sm:$0xff]  }
  0x11   :  { %1990 = vmatprep.subr.bf16.mxu1 %v2227_v29  ;;  %v2200_v48 = vld [vmem:[%s3073_s1 + $0x150] ss:$12 sps:$4 sm:$0xff]   ;;  %v2253_v50 = vld [vmem:[%s3073_s1 + $0x188] ss:$12 sps:$4 sm:$0xff]   ;;  %v2257_v52 = vld [vmem:[%s3073_s1 + $0x260] ss:$12 sps:$4 sm:$0xff]  }
  0x12   :  { %v2203_v53 = vld [vmem:[%s3073_s1 + $0x168] ss:$12 sps:$4 sm:$0xff]   ;;  %v2208_v54 = vld [vmem:[%s3073_s1 + $0x184] ss:$12 sps:$4 sm:$0xff]   ;;  %v2258_v55 = vld [vmem:[%s3073_s1 + $0x1a0] ss:$12 sps:$4 sm:$0xff]  }
  0x13   :  { %1066 = vmatpush1.bf16.msra.mxu0 %v2170_v9  ;;  %v2262_v56 = vld [vmem:[%s3073_s1 + $0x278] ss:$12 sps:$4 sm:$0xff]   ;;  %v2206_v57 = vld [vmem:[%s3073_s1 + $0x180] ss:$12 sps:$4 sm:$0xff]   ;;  %v2211_v58 = vld [vmem:[%s3073_s1 + $0x19c] ss:$12 sps:$4 sm:$0xff]  }
  0x14   :  { %1067 = vmatprep.subr.bf16.mxu0 %v2171_v10  ;;  %1991 = vmatpush3.bf16.msra.mxu1 %v2228_v30  ;;  %v2263_v59 = vld [vmem:[%s3073_s1 + $0x1b8] ss:$12 sps:$4 sm:$0xff]   ;;  %v2267_v60 = vld [vmem:[%s3073_s1 + $0x290] ss:$12 sps:$4 sm:$0xff]   ;;  %v2216_v62 = vld [vmem:[%s3073_s1 + $0x1b4] ss:$12 sps:$4 sm:$0xff]  }
  0x15   :  { %1992 = vmatprep.subr.bf16.mxu1 %v2232_v31  ;;  %v2209_v61 = vld [vmem:[%s3073_s1 + $0x198] ss:$12 sps:$4 sm:$0xff]   ;;  %v2268_v63 = vld [vmem:[%s3073_s1 + $0x1d0] ss:$12 sps:$4 sm:$0xff]   ;;  %v2272_v0 = vld [vmem:[%s3073_s1 + $0x2a8] ss:$12 sps:$4 sm:$0xff]  }
  0x16   :  { %v2214_v1 = vld [vmem:[%s3073_s1 + $0x1b0] ss:$12 sps:$4 sm:$0xff]   ;;  %v2221_v2 = vld [vmem:[%s3073_s1 + $0x1cc] ss:$12 sps:$4 sm:$0xff]   ;;  %v2273_v3 = vld [vmem:[%s3073_s1 + $0x1e8] ss:$12 sps:$4 sm:$0xff]  }
  0x17   :  { %1068 = vmatpush1.bf16.msra.mxu0 %v2173_v11  ;;  %v2277_v4 = vld [vmem:[%s3073_s1 + $0x2c0] ss:$12 sps:$4 sm:$0xff]   ;;  %v2219_v6 = vld [vmem:[%s3073_s1 + $0x1c8] ss:$12 sps:$4 sm:$0xff]   ;;  %v2226_v8 = vld [vmem:[%s3073_s1 + $0x1e4] ss:$12 sps:$4 sm:$0xff]  }
  0x18   :  { %1069 = vmatprep.subr.bf16.mxu0 %v2174_v12  ;;  %1993 = vmatpush3.bf16.msra.mxu1 %v2233_v34  ;;  %v29_v5 = vld [vmem:[%s3072_s0 + $0x8] sm:$0xff]  ;;  %v2282_v10 = vld [vmem:[%s3073_s1 + $0x2d8] ss:$12 sps:$4 sm:$0xff]   ;;  %v2289_v14 = vld [vmem:[%s3073_s1 + $0x2f0] ss:$12 sps:$4 sm:$0xff]  }
  0x19   :  { %1994 = vmatprep.subr.bf16.mxu1 %v2237_v35  ;;  %v1797_v7 = vcombine.high %v29_v5, %v29_v5  ;;  %v2278_v9 = vld [vmem:[%s3073_s1 + $0x200] ss:$12 sps:$4 sm:$0xff]   ;;  %v2231_v12 = vld [vmem:[%s3073_s1 + $0x1fc] ss:$12 sps:$4 sm:$0xff]   ;;  %v2283_v13 = vld [vmem:[%s3073_s1 + $0x218] ss:$12 sps:$4 sm:$0xff]   ;;  %v2714_v22 = vcombine.low %v29_v5, %v29_v5 }
  0x1a   :  { %v2224_v11 = vld [vmem:[%s3073_s1 + $0x1e0] ss:$12 sps:$4 sm:$0xff]   ;;  %v2290_v17 = vld [vmem:[%s3073_s1 + $0x230] ss:$12 sps:$4 sm:$0xff]   ;;  %v2294_v18 = vld [vmem:[%s3073_s1 + $0x3c8] ss:$12 sps:$4 sm:$0xff]  }
  0x1b   :  { %1070 = vmatpush1.bf16.msra.mxu0 %v2176_v15  ;;  %v2229_v15 = vld [vmem:[%s3073_s1 + $0x1f8] ss:$12 sps:$4 sm:$0xff]   ;;  %v2295_v21 = vld [vmem:[%s3073_s1 + $0x308] ss:$12 sps:$4 sm:$0xff]   ;;  %v2300_v26 = vld [vmem:[%s3073_s1 + $0x320] ss:$12 sps:$4 sm:$0xff]  }
  0x1c   :  { %1071 = vmatprep.subr.bf16.mxu0 %v2177_v16  ;;  %1995 = vmatpush3.bf16.msra.mxu1 %v2238_v38  ;;  %v2236_v16 = vld [vmem:[%s3073_s1 + $0x214] ss:$12 sps:$4 sm:$0xff]   ;;  %v2246_v25 = vld [vmem:[%s3073_s1 + $0x244] ss:$12 sps:$4 sm:$0xff]   ;;  %v2251_v29 = vld [vmem:[%s3073_s1 + $0x25c] ss:$12 sps:$4 sm:$0xff]  }
  0x1d   :  { %1996 = vmatprep.subr.bf16.mxu1 %v2242_v39  ;;  %v2305_v30 = vld [vmem:[%s3073_s1 + $0x338] ss:$12 sps:$4 sm:$0xff]   ;;  %v2309_v31 = vld [vmem:[%s3073_s1 + $0x410] ss:$12 sps:$4 sm:$0xff]   ;;  %v2314_v35 = vld [vmem:[%s3073_s1 + $0x428] ss:$12 sps:$4 sm:$0xff]  }
  0x1e   :  { %v2310_v34 = vld [vmem:[%s3073_s1 + $0x350] ss:$12 sps:$4 sm:$0xff]   ;;  %v2315_v38 = vld [vmem:[%s3073_s1 + $0x368] ss:$12 sps:$4 sm:$0xff]  }
  0x1f   :  { %1072 = vmatpush1.bf16.msra.mxu0 %v2179_v19  ;;  %v2234_v19 = vld [vmem:[%s3073_s1 + $0x210] ss:$12 sps:$4 sm:$0xff]  }
  0x20   :  { %1073 = vmatprep.subr.bf16.mxu0 %v2180_v20  ;;  %1997 = vmatpush3.bf16.msra.mxu1 %v2243_v42  ;;  %v2241_v20 = vld [vmem:[%s3073_s1 + $0x22c] ss:$12 sps:$4 sm:$0xff]   ;;  %v30_v39 = vld [vmem:[%s3072_s0 + $0x10] sm:$0xff] }
  0x21   :  { %1998 = vmatprep.subr.bf16.mxu1 %v2247_v43  ;;  %v2259_v42 = vld [vmem:[%s3073_s1 + $0x288] ss:$12 sps:$4 sm:$0xff]   ;;  %v2266_v43 = vld [vmem:[%s3073_s1 + $0x2a4] ss:$12 sps:$4 sm:$0xff]  }
  0x23   :  { %1074 = vmatpush1.bf16.msra.mxu0 %v2182_v23  ;;  %v2299_v23 = vld [vmem:[%s3073_s1 + $0x3e0] ss:$12 sps:$4 sm:$0xff]  }
  0x24   :  { %1075 = vmatprep.subr.bf16.mxu0 %v2183_v24  ;;  %1999 = vmatpush3.bf16.msra.mxu1 %v2248_v46  ;;  %v2239_v24 = vld [vmem:[%s3073_s1 + $0x228] ss:$12 sps:$4 sm:$0xff]   ;;  %v2264_v46 = vld [vmem:[%s3073_s1 + $0x2a0] ss:$12 sps:$4 sm:$0xff]  }
  0x25   :  { %2006 = vmatprep.subr.bf16.mxu1 %v2252_v47  ;;  %v2271_v47 = vld [vmem:[%s3073_s1 + $0x2bc] ss:$12 sps:$4 sm:$0xff]  }
  0x27   :  { %1076 = vmatpush1.bf16.msra.mxu0 %v2185_v27  ;;  %1254 = vmatmul.mubr.bf16.vlgmr.msra.gmra.mrb[0].mxu1 %v1794_v51  ;;  %v2304_v27 = vld [vmem:[%s3073_s1 + $0x3f8] ss:$12 sps:$4 sm:$0xff]  }
  0x28   :  { %1077 = vmatprep.subr.bf16.mxu0 %v2186_v28  ;;  %2007 = vmatpush3.bf16.msra.mxu1 %v2253_v50  ;;  %v2244_v28 = vld [vmem:[%s3073_s1 + $0x240] ss:$12 sps:$4 sm:$0xff]   ;;  %v2269_v50 = vld [vmem:[%s3073_s1 + $0x2b8] ss:$12 sps:$4 sm:$0xff]  }
  0x29   :  { %2008 = vmatprep.subr.bf16.mxu1 %v2257_v52  ;;  %1293 = vmatprep.mubr.bf16.mxu1 %v1797_v7  ;;  %v2330_v52 = vld [vmem:[%s3073_s1 + $0x3b0] ss:$12 sps:$4 sm:$0xff]  }
  0x2b   :  { %1078 = vmatpush1.bf16.msra.mxu0 %v2188_v32  ;;  %v2249_v32 = vld [vmem:[%s3073_s1 + $0x258] ss:$12 sps:$4 sm:$0xff]  }
  0x2c   :  { %1079 = vmatprep.subr.bf16.mxu0 %v2189_v33  ;;  %2009 = vmatpush3.bf16.msra.mxu1 %v2258_v55  ;;  %v2256_v33 = vld [vmem:[%s3073_s1 + $0x274] ss:$12 sps:$4 sm:$0xff]  }
  0x2d   :  { %2010 = vmatprep.subr.bf16.mxu1 %v2262_v56  ;;  %v2339_v55 = vld [vmem:[%s3073_s1 + $0x488] ss:$12 sps:$4 sm:$0xff]   ;;  %v2813_v56 = vcombine.low %v30_v39, %v30_v39 }
  0x2f   :  { %1080 = vmatpush1.bf16.msra.mxu0 %v2191_v36  ;;  %v2254_v36 = vld [vmem:[%s3073_s1 + $0x270] ss:$12 sps:$4 sm:$0xff]  }
  0x30   :  { %1081 = vmatprep.subr.bf16.mxu0 %v2192_v37  ;;  %2011 = vmatpush3.bf16.msra.mxu1 %v2263_v59  ;;  %v2261_v37 = vld [vmem:[%s3073_s1 + $0x28c] ss:$12 sps:$4 sm:$0xff]   ;;  %v2288_v59 = vld [vmem:[%s3073_s1 + $0x304] ss:$12 sps:$4 sm:$0xff]  }
  0x31   :  { %2012 = vmatprep.subr.bf16.mxu1 %v2267_v60  ;;  %v2286_v60 = vld [vmem:[%s3073_s1 + $0x300] ss:$12 sps:$4 sm:$0xff]  }
  0x33   :  { %1082 = vmatpush1.bf16.msra.mxu0 %v2194_v40  ;;  %v2319_v40 = vld [vmem:[%s3073_s1 + $0x440] ss:$12 sps:$4 sm:$0xff]  }
  0x34   :  { %1083 = vmatprep.subr.bf16.mxu0 %v2195_v41  ;;  %2013 = vmatpush3.bf16.msra.mxu1 %v2268_v63  ;;  %v1799_v41 = vcombine.high %v30_v39, %v30_v39  ;;  %v2291_v63 = vld [vmem:[%s3073_s1 + $0x318] ss:$12 sps:$4 sm:$0xff]  }
  0x35   :  { %2014 = vmatprep.subr.bf16.mxu1 %v2272_v0  ;;  %v2298_v0 = vld [vmem:[%s3073_s1 + $0x334] ss:$12 sps:$4 sm:$0xff]  }
  0x37   :  { %1084 = vmatpush1.bf16.msra.mxu0 %v2197_v44  ;;  %v2320_v44 = vld [vmem:[%s3073_s1 + $0x380] ss:$12 sps:$4 sm:$0xff]  }
  0x38   :  { %1085 = vmatprep.subr.bf16.mxu0 %v2198_v45  ;;  %2015 = vmatpush3.bf16.msra.mxu1 %v2273_v3  ;;  %v2324_v45 = vld [vmem:[%s3073_s1 + $0x458] ss:$12 sps:$4 sm:$0xff]  }
  0x39   :  { %2016 = vmatprep.subr.bf16.mxu1 %v2277_v4 }
  0x3b   :  { %1086 = vmatpush1.bf16.msra.mxu0 %v2200_v48  ;;  %v2325_v48 = vld [vmem:[%s3073_s1 + $0x398] ss:$12 sps:$4 sm:$0xff]  }
  0x3c   :  { %1087 = vmatprep.subr.bf16.mxu0 %v2201_v49  ;;  %2017 = vmatpush3.bf16.msra.mxu1 %v2278_v9  ;;  %v2329_v49 = vld [vmem:[%s3073_s1 + $0x470] ss:$12 sps:$4 sm:$0xff]  }
  0x3d   :  { %2018 = vmatprep.subr.bf16.mxu1 %v2282_v10 }
  0x3f   :  { %1088 = vmatpush1.bf16.msra.mxu0 %v2203_v53  ;;  %v2274_v53 = vld [vmem:[%s3073_s1 + $0x2d0] ss:$12 sps:$4 sm:$0xff]  }
  0x40   :  { %1098 = vmatprep.subr.bf16.mxu0 %v2208_v54  ;;  %2019 = vmatpush3.bf16.msra.mxu1 %v2283_v13  ;;  %v2281_v54 = vld [vmem:[%s3073_s1 + $0x2ec] ss:$12 sps:$4 sm:$0xff]  }
  0x41   :  { %2020 = vmatprep.subr.bf16.mxu1 %v2289_v14 }
  0x42   :  { %1090 = vmatmul.mubr.bf16.vlgmr.msra.gmra.mrb[0].mxu0 %v1794_v51  ;;  %v2276_v51 = vld [vmem:[%s3073_s1 + $0x2d4] ss:$12 sps:$4 sm:$0xff]  }
  0x43   :  { %1099 = vmatpush1.bf16.msra.mxu0 %v2206_v57  ;;  %1130 = vmatprep.mubr.bf16.mxu0 %v1797_v7  ;;  %v2279_v57 = vld [vmem:[%s3073_s1 + $0x2e8] ss:$12 sps:$4 sm:$0xff]  }
  0x44   :  { %1100 = vmatprep.subr.bf16.mxu0 %v2211_v58  ;;  %2021 = vmatpush3.bf16.msra.mxu1 %v2290_v17  ;;  %v2415_v58 = vmov 0.0  }
  0x45   :  { %2028 = vmatprep.subr.bf16.mxu1 %v2294_v18 }
  0x47   :  { %1101 = vmatpush1.bf16.msra.mxu0 %v2209_v61  ;;  %1294 = vmatmul.mubr.bf16.vlgmr.msra.gmra.mrb[4].mxu1 %v2714_v22  ;;  %v2831_v61 = vld [vmem:[%s3072_s0 + $0x18] ss:$0 sps:$4 sm:$0xff]  }
  0x48   :  { %1102 = vmatprep.subr.bf16.mxu0 %v2216_v62  ;;  %2029 = vmatpush3.bf16.msra.mxu1 %v2295_v21  ;;  %v2293_v62 = vld [vmem:[%s3073_s1 + $0x31c] ss:$12 sps:$4 sm:$0xff]  }
  0x49   :  { %2030 = vmatprep.subr.bf16.mxu1 %v2299_v23  ;;  %1333 = vmatprep.mubr.bf16.mxu1 %v1799_v41 }
  0x4b   :  { %1103 = vmatpush1.bf16.msra.mxu0 %v2214_v1  ;;  %v2296_v1 = vld [vmem:[%s3073_s1 + $0x330] ss:$12 sps:$4 sm:$0xff]  }
  0x4c   :  { %1104 = vmatprep.subr.bf16.mxu0 %v2221_v2  ;;  %2031 = vmatpush3.bf16.msra.mxu1 %v2300_v26  ;;  %v2303_v2 = vld [vmem:[%s3073_s1 + $0x34c] ss:$12 sps:$4 sm:$0xff]  }
  0x4d   :  { %2032 = vmatprep.subr.bf16.mxu1 %v2304_v27 }
  0x4f   :  { %1105 = vmatpush1.bf16.msra.mxu0 %v2219_v6 }
  0x50   :  { %1106 = vmatprep.subr.bf16.mxu0 %v2226_v8  ;;  %2033 = vmatpush3.bf16.msra.mxu1 %v2305_v30 }
  0x51   :  { %2034 = vmatprep.subr.bf16.mxu1 %v2309_v31 }
  0x53   :  { %1107 = vmatpush1.bf16.msra.mxu0 %v2224_v11 }
  0x54   :  { %1108 = vmatprep.subr.bf16.mxu0 %v2231_v12  ;;  %2035 = vmatpush3.bf16.msra.mxu1 %v2310_v34 }
  0x55   :  { %2036 = vmatprep.subr.bf16.mxu1 %v2314_v35 }
  0x57   :  { %1109 = vmatpush1.bf16.msra.mxu0 %v2229_v15 }
  0x58   :  { %1110 = vmatprep.subr.bf16.mxu0 %v2236_v16  ;;  %2037 = vmatpush3.bf16.msra.mxu1 %v2315_v38 }
  0x59   :  { %2038 = vmatprep.subr.bf16.mxu1 %v2319_v40 }
  0x5b   :  { %1111 = vmatpush1.bf16.msra.mxu0 %v2234_v19 }
  0x5c   :  { %1112 = vmatprep.subr.bf16.mxu0 %v2241_v20  ;;  %2039 = vmatpush3.bf16.msra.mxu1 %v2320_v44 }
  0x5d   :  { %2040 = vmatprep.subr.bf16.mxu1 %v2324_v45 }
  0x5f   :  { %1113 = vmatpush1.bf16.msra.mxu0 %v2239_v24 }
  0x60   :  { %1114 = vmatprep.subr.bf16.mxu0 %v2246_v25  ;;  %2041 = vmatpush3.bf16.msra.mxu1 %v2325_v48 }
  0x61   :  { %2042 = vmatprep.subr.bf16.mxu1 %v2329_v49 }
  0x63   :  { %1115 = vmatpush1.bf16.msra.mxu0 %v2244_v28 }
  0x64   :  { %1116 = vmatprep.subr.bf16.mxu0 %v2251_v29  ;;  %2043 = vmatpush3.bf16.msra.mxu1 %v2330_v52 }
  0x65   :  { %2092 = vmatprep.subr.bf16.mxu1 %v2415_v58 }
  0x67   :  { %1117 = vmatpush1.bf16.msra.mxu0 %v2249_v32  ;;  %1334 = vmatmul.mubr.bf16.vlgmr.msra.gmra.mrb[8].mxu1 %v2813_v56 }
  0x68   :  { %1118 = vmatprep.subr.bf16.mxu0 %v2256_v33  ;;  %2093 = vmatpush3.bf16.msra.mxu1 %v2339_v55 }
  0x69   :  { %2094 = vmatprep.mubr.msk.bf16.mxu1 %vm2416_vm1, %v2415_v58 }
  0x6b   :  { %1119 = vmatpush1.bf16.msra.mxu0 %v2254_v36 }
  0x6c   :  { %1120 = vmatprep.subr.bf16.mxu0 %v2261_v37 }
  0x6f   :  { %1121 = vmatpush1.bf16.msra.mxu0 %v2259_v42  ;;  %2095 = vmatmul.mubr.msk.bf16.vlgmr.msra.gmra.mrb[12].mxu1 %vm1053_vm0, %v2831_v61 }
  0x70   :  { %1122 = vmatprep.subr.bf16.mxu0 %v2266_v43 }
  0x73   :  { %1123 = vmatpush1.bf16.msra.mxu0 %v2264_v46 }
  0x74   :  { %1124 = vmatprep.subr.bf16.mxu0 %v2271_v47 }
  0x77   :  { %1125 = vmatpush1.bf16.msra.mxu0 %v2269_v50 }
  0x78   :  { %1126 = vmatprep.subr.bf16.mxu0 %v2276_v51 }
  0x7b   :  { %1127 = vmatpush1.bf16.msra.mxu0 %v2274_v53 }
  0x7c   :  { %1128 = vmatprep.subr.bf16.mxu0 %v2281_v54 }
  0x7f   :  { %1129 = vmatpush1.bf16.msra.mxu0 %v2279_v57 }
  0x80   :  { %1139 = vmatprep.subr.bf16.mxu0 %v2288_v59 }
  0x82   :  { %1131 = vmatmul.mubr.bf16.vlgmr.msra.gmra.mrb[0].mxu0 %v2714_v22 }
  0x83   :  { %1140 = vmatpush1.bf16.msra.mxu0 %v2286_v60  ;;  %1171 = vmatprep.mubr.bf16.mxu0 %v1799_v41 }
  0x84   :  { %1141 = vmatprep.subr.bf16.mxu0 %v2293_v62 }
  0x87   :  { %1142 = vmatpush1.bf16.msra.mxu0 %v2291_v63 }
  0x88   :  { %1143 = vmatprep.subr.bf16.mxu0 %v2298_v0 }
  0x89   :  { %12 = vsyncpa [#allocation3], 0  ;;  %v2301_v3 = vld [vmem:[%s3073_s1 + $0x348] ss:$12 sps:$4 sm:$0xff]   ;;  %v2308_v4 = vld [vmem:[%s3073_s1 + $0x364] ss:$12 sps:$4 sm:$0xff]   ;;  %v230_v48 = vlaneseq }
  0x8a   :  { %v2306_v5 = vld [vmem:[%s3073_s1 + $0x360] ss:$12 sps:$4 sm:$0xff]   ;;  %v2313_v6 = vld [vmem:[%s3073_s1 + $0x37c] ss:$12 sps:$4 sm:$0xff]   ;;  %v2311_v7 = vld [vmem:[%s3073_s1 + $0x378] ss:$12 sps:$4 sm:$0xff]  }
  0x8b   :  { %1144 = vmatpush1.bf16.msra.mxu0 %v2296_v1  ;;  %v2318_v8 = vld [vmem:[%s3073_s1 + $0x394] ss:$12 sps:$4 sm:$0xff]   ;;  %v2316_v9 = vld [vmem:[%s3073_s1 + $0x390] ss:$12 sps:$4 sm:$0xff]   ;;  %v2323_v10 = vld [vmem:[%s3073_s1 + $0x3ac] ss:$12 sps:$4 sm:$0xff]  }
  0x8c   :  { %1145 = vmatprep.subr.bf16.mxu0 %v2303_v2  ;;  %v2321_v11 = vld [vmem:[%s3073_s1 + $0x3a8] ss:$12 sps:$4 sm:$0xff]   ;;  %v2328_v12 = vld [vmem:[%s3073_s1 + $0x3c4] ss:$12 sps:$4 sm:$0xff]   ;;  %v2326_v13 = vld [vmem:[%s3073_s1 + $0x3c0] ss:$12 sps:$4 sm:$0xff]  }
  0x8d   :  { %v2333_v14 = vld [vmem:[%s3073_s1 + $0x3dc] ss:$12 sps:$4 sm:$0xff]   ;;  %v2331_v15 = vld [vmem:[%s3073_s1 + $0x3d8] ss:$12 sps:$4 sm:$0xff]   ;;  %v2338_v16 = vld [vmem:[%s3073_s1 + $0x3f4] ss:$12 sps:$4 sm:$0xff]  }
  0x8e   :  { %v2336_v17 = vld [vmem:[%s3073_s1 + $0x3f0] ss:$12 sps:$4 sm:$0xff]   ;;  %v2342_v18 = vld [vmem:[%s3073_s1 + $0x40c] ss:$12 sps:$4 sm:$0xff]   ;;  %v2340_v19 = vld [vmem:[%s3073_s1 + $0x408] ss:$12 sps:$4 sm:$0xff]  }
  0x8f   :  { %1146 = vmatpush1.bf16.msra.mxu0 %v2301_v3  ;;  %v2346_v20 = vld [vmem:[%s3073_s1 + $0x424] ss:$12 sps:$4 sm:$0xff]   ;;  %v2344_v21 = vld [vmem:[%s3073_s1 + $0x420] ss:$12 sps:$4 sm:$0xff]   ;;  %v2349_v22 = vld [vmem:[%s3073_s1 + $0x43c] ss:$12 sps:$4 sm:$0xff]  }
  0x90   :  { %1147 = vmatprep.subr.bf16.mxu0 %v2308_v4  ;;  %v2347_v23 = vld [vmem:[%s3073_s1 + $0x438] ss:$12 sps:$4 sm:$0xff]   ;;  %v2352_v24 = vld [vmem:[%s3073_s1 + $0x454] ss:$12 sps:$4 sm:$0xff]   ;;  %v2350_v25 = vld [vmem:[%s3073_s1 + $0x450] ss:$12 sps:$4 sm:$0xff]  }
  0x91   :  { %v2355_v26 = vld [vmem:[%s3073_s1 + $0x46c] ss:$12 sps:$4 sm:$0xff]   ;;  %v2353_v27 = vld [vmem:[%s3073_s1 + $0x468] ss:$12 sps:$4 sm:$0xff]   ;;  %v2358_v28 = vld [vmem:[%s3073_s1 + $0x484] ss:$12 sps:$4 sm:$0xff]  }
  0x92   :  { %v2356_v29 = vld [vmem:[%s3073_s1 + $0x480] ss:$12 sps:$4 sm:$0xff]   ;;  %v2417_v30 = vmov 0   ;;  %v2363_v35 = vld [vmem:[%s3075_s3 + $0x50] sm:$0xff]   ;;  %v2365_v37 = vld [vmem:[%s3075_s3 + $0x58] sm:$0xff]   ;;  %v231_v51 = vshrl.u32 %v230_v48, 7 }
  0x93   :  { %1148 = vmatpush1.bf16.msra.mxu0 %v2306_v5  ;;  %v2359_v31 = vld [vmem:[%s3075_s3 + $0x40] sm:$0xff]   ;;  %v2361_v33 = vld [vmem:[%s3075_s3 + $0x48] sm:$0xff]   ;;  %v2364_v36 = vld [vmem:[%s3075_s3 + $0x10] sm:$0xff]   ;;  %s2418_s15 = smov [#allocation2]  }
  0x94   :  { %1149 = vmatprep.subr.bf16.mxu0 %v2313_v6  ;;  %v2360_v32 = vld [vmem:[%s3075_s3] sm:$0xff]   ;;  %2052 = vmatprep.subr.bf16.mxu1 %v2359_v31  ;;  %v2362_v34 = vld [vmem:[%s3075_s3 + $0x8] sm:$0xff]   ;;  %v2366_v38 = vld [vmem:[%s3075_s3 + $0x18] sm:$0xff]   ;;  %v240_v54 = vsub.s32 2, %v231_v51  ;;  %s1786_s16 = sshll.u32 %s2418_s15, 4  ;;  %s1787_s16 = int_to_ptr.vmem [resolvable:$true] %s1786_s16 }
  0x95   :  { %2053 = vmatpush3.bf16.msra.mxu1 %v2360_v32  ;;  %v2367_v39 = vld [vmem:[%s3075_s3 + $0x60] sm:$0xff]   ;;  %v2369_v41 = vld [vmem:[%s3075_s3 + $0x68] sm:$0xff]   ;;  %v2371_v49 = vld [vmem:[%s3075_s3 + $0x70] sm:$0xff]   ;;  %p2396_p1 = scmp.lt.s32.totalorder %s1787_s16, %s1787_s16 }
  0x96   :  { %2054 = vmatprep.subr.bf16.mxu1 %v2361_v33  ;;  %v2368_v40 = vld [vmem:[%s3075_s3 + $0x20] sm:$0xff]   ;;  %v2370_v42 = vld [vmem:[%s3075_s3 + $0x28] sm:$0xff]   ;;  %v2372_v50 = vld [vmem:[%s3075_s3 + $0x30] sm:$0xff]  }
  0x97   :  { %1150 = vmatpush1.bf16.msra.mxu0 %v2311_v7  ;;  %v2373_v52 = vld [vmem:[%s3075_s3 + $0x78] sm:$0xff]   ;;  %v228_v55 = vld [vmem:[%s3074_s2] sm:$0x7]  ;;  %v2380_v31 = vld [vmem:[%s3075_s3 + $0xa8] sm:$0xff]  }
  0x98   :  { %1151 = vmatprep.subr.bf16.mxu0 %v2318_v8  ;;  %v2374_v53 = vld [vmem:[%s3075_s3 + $0x38] sm:$0xff]   ;;  %v2381_v32 = vld [vmem:[%s3075_s3 + $0xb0] sm:$0xff]  }
  0x99   :  { %2055 = vmatpush3.bf16.msra.mxu1 %v2362_v34  ;;  %v2382_v33 = vld [vmem:[%s3075_s3 + $0xb8] sm:$0xff]  }
  0x9a   :  { %2056 = vmatprep.subr.bf16.mxu1 %v2363_v35 }
  0x9b   :  { %1152 = vmatpush1.bf16.msra.mxu0 %v2316_v9 }
  0x9c   :  { %1153 = vmatprep.subr.bf16.mxu0 %v2323_v10 }
  0x9d   :  { %2057 = vmatpush3.bf16.msra.mxu1 %v2364_v36  ;;  %v2383_v36 = vld [vmem:[%s3077_s5] sm:$0xff]  }
  0x9e   :  { %2058 = vmatprep.subr.bf16.mxu1 %v2365_v37  ;;  %v2384_v37 = vld [vmem:[%s3077_s5 + $0x8] sm:$0xff]  }
  0x9f   :  { %1154 = vmatpush1.bf16.msra.mxu0 %v2321_v11 }
  0xa0   :  { %1155 = vmatprep.subr.bf16.mxu0 %v2328_v12  ;;  %v232_v12 = vsub.s32 0, %v231_v51 }
  0xa1   :  { %2059 = vmatpush3.bf16.msra.mxu1 %v2366_v38  ;;  %v2385_v38 = vld [vmem:[%s3077_s5 + $0x10] sm:$0xff]  }
  0xa2   :  { %2060 = vmatprep.subr.bf16.mxu1 %v2367_v39  ;;  %v2386_v39 = vld [vmem:[%s3077_s5 + $0x18] sm:$0xff]  }
  0xa3   :  { %1156 = vmatpush1.bf16.msra.mxu0 %v2326_v13  ;;  %v236_v13 = vsub.s32 1, %v231_v51 }
  0xa4   :  { %1157 = vmatprep.subr.bf16.mxu0 %v2333_v14  ;;  %v233_v14 = vrot.slane %v228_v55, %v232_v12 }
  0xa5   :  { %2061 = vmatpush3.bf16.msra.mxu1 %v2368_v40  ;;  %v2387_v40 = vld [vmem:[%s3077_s5 + $0x20] sm:$0xff]  }
  0xa6   :  { %2062 = vmatprep.subr.bf16.mxu1 %v2369_v41  ;;  %v2388_v41 = vld [vmem:[%s3077_s5 + $0x28] sm:$0xff]  }
  0xa7   :  { %1158 = vmatpush1.bf16.msra.mxu0 %v2331_v15  ;;  %v237_v15 = vrot.slane %v228_v55, %v236_v13 }
  0xa8   :  { %1159 = vmatprep.subr.bf16.mxu0 %v2338_v16 }
  0xa9   :  { %2063 = vmatpush3.bf16.msra.mxu1 %v2370_v42  ;;  %v2389_v42 = vld [vmem:[%s3077_s5 + $0x30] sm:$0xff]  }
  0xaa   :  { %2064 = vmatprep.subr.bf16.mxu1 %v2371_v49  ;;  %v1950_v49 = vld [vmem:[%s3076_s4] ss:$0 sm:$0xff]  ;;  %s2391_s4 = scalar_lea.vmem %s1787_s16, 128 }
  0xab   :  { %1160 = vmatpush1.bf16.msra.mxu0 %v2336_v17  ;;  %p2392_p0 = scmp.ne.s32.totalorder %s1787_s16, %s2391_s4  ;;  %p2397_p2 = scmp.lt.s32.totalorder %s2391_s4, %s2391_s4 }
  0xac   :  { %1161 = vmatprep.subr.bf16.mxu0 %v2342_v18 }
  0xad   :  { %2065 = vmatpush3.bf16.msra.mxu1 %v2372_v50  ;;  %p2398_p3 = por %p2397_p2, %p2396_p1 }
  0xae   :  { %2066 = vmatprep.subr.bf16.mxu1 %v2373_v52 }
  0xaf   :  { %1162 = vmatpush1.bf16.msra.mxu0 %v2340_v19  ;;  %p2399_p4 = pnand %p2398_p3, %p2392_p0 }
  0xb0   :  { %1163 = vmatprep.subr.bf16.mxu0 %v2346_v20 }
  0xb1   :  { %2067 = vmatpush3.bf16.msra.mxu1 %v2374_v53 }
  0xb2   :  { %2098 = vmatprep.subr.bf16.mxu1 %v2415_v58 }
  0xb3   :  { %1164 = vmatpush1.bf16.msra.mxu0 %v2344_v21 }
  0xb4   :  { %1165 = vmatprep.subr.bf16.mxu0 %v2349_v22 }
  0xb7   :  { %1166 = vmatpush1.bf16.msra.mxu0 %v2347_v23 }
  0xb8   :  { %1167 = vmatprep.subr.bf16.mxu0 %v2352_v24 }
  0xbb   :  { %1168 = vmatpush1.bf16.msra.mxu0 %v2350_v25  ;;  %v2375_v25 = vld [vmem:[%s3075_s3 + $0x80] sm:$0xff]  }
  0xbc   :  { %1169 = vmatprep.subr.bf16.mxu0 %v2355_v26 }
  0xbf   :  { %1170 = vmatpush1.bf16.msra.mxu0 %v2353_v27  ;;  %v2376_v27 = vld [vmem:[%s3075_s3 + $0x88] sm:$0xff]  }
  0xc0   :  { %1180 = vmatprep.subr.bf16.mxu0 %v2358_v28  ;;  %v2377_v28 = vld [vmem:[%s3075_s3 + $0x90] sm:$0xff]  }
  0xc2   :  { %1172 = vmatmul.mubr.bf16.vlgmr.msra.gmra.mrb[0].mxu0 %v2813_v56  ;;  %v241_v56 = vrot.slane %v228_v55, %v240_v54 }
  0xc3   :  { %1181 = vmatpush1.bf16.msra.mxu0 %v2356_v29  ;;  %1212 = vmatprep.mubr.bf16.mxu0 %v2417_v30  ;;  %v2378_v29 = vld [vmem:[%s3075_s3 + $0x98] sm:$0xff]   ;;  %v2379_v30 = vld [vmem:[%s3075_s3 + $0xa0] sm:$0xff]  }
  0xce   :  { %1948 = vmatmul.mubr.msk.bf16.vlgmr.msra.gmra.mrb[0].mxu0 %vm1053_vm0, %v2831_v61 }
  0xfa   :  { %v2000_v43 = vpop.f32.mrb[0].mxu1 }
  0xfb   :  { %v2001_v44 = vpop.f32.mrb[1].mxu1 }
  0xfc   :  { %v2002_v45 = vadd.f32 %v2001_v44, %v2000_v43  ;;  %v2003_v46 = vpop.f32.mrb[2].mxu1  ;;  %v2390_v43 = vld [vmem:[%s3077_s5 + $0x38] sm:$0xff]  }
  0xfd   :  { %v2004_v47 = vpop.f32.mrb[3].mxu1 }
  0xfe   :  { %v1256_v57 = vadd.f32 %v2002_v45, %v241_v56 }
 0x11a   :  { %v2022_v59 = vpop.f32.mrb[4].mxu1 }
 0x11b   :  { %v2023_v60 = vpop.f32.mrb[5].mxu1 }
 0x11c   :  { %v2024_v61 = vadd.f32 %v2023_v60, %v2022_v59  ;;  %v2025_v62 = vpop.f32.mrb[6].mxu1 }
 0x11d   :  { %v2026_v63 = vpop.f32.mrb[7].mxu1 }
 0x11e   :  { %v1296_v0 = vadd.f32 %v2024_v61, %v1256_v57  ;;  %v1975_v57 = vld [vmem:[%s3078_s6] ss:$0 sm:$0xff] }
 0x13a   :  { %v2044_v1 = vpop.f32.mrb[8].mxu1 }
 0x13b   :  { %v2045_v2 = vpop.f32.mrb[9].mxu1 }
 0x13c   :  { %v2046_v3 = vadd.f32 %v2045_v2, %v2044_v1  ;;  %v2047_v4 = vpop.f32.mrb[10].mxu1 }
 0x13d   :  { %v2048_v5 = vpop.f32.mrb[11].mxu1 }
 0x13e   :  { %v1336_v6 = vadd.f32 %v2046_v3, %v1296_v0 }
 0x142   :  { %v1375_v7 = vpop.f32.mrb[12].mxu1 }
 0x143   :  { %v1376_v8 = vadd.f32 %v1375_v7, %v1336_v6  ;;  %v2096_v9 = vpop.f32.mrb[13].mxu1 }
 0x144   :  { %v1378_v10 = vpop.f32.mrb[14].mxu1 }
 0x145   :  { %v2097_v11 = vpop.f32.mrb[15].mxu1  ;;  %v1383_v34 = vmax.f32 %v1376_v8, 0.0 }
 0x147   :  { %v1386_v35 = vpack.c.bf16 %v1383_v34, %v1383_v34 }
 0x1a1   :  { %v1214_v16 = vpop.f32.mrb[0].mxu0 }
 0x1a2   :  { %v2138_v17 = vadd.f32 %v1214_v16, %v233_v14  ;;  %v1216_v18 = vpop.f32.mrb[1].mxu0 }
 0x1a3   :  { %v2139_v19 = vadd.f32 %v1216_v18, %v237_v15  ;;  %v1218_v20 = vpop.f32.mrb[2].mxu0 }
 0x1a4   :  { %v1381_v21 = vmax.f32 %v2138_v17, 0.0  ;;  %v1219_v22 = vpop.f32.mrb[3].mxu0 }
 0x1a5   :  { %v1382_v23 = vmax.f32 %v2139_v19, 0.0 }
 0x1a6   :  { %v1384_v26 = vpack.c.bf16 %v1381_v21, %v1381_v21 }
 0x1a7   :  { %v1385_v24 = vpack.c.bf16 %v1382_v23, %v1382_v23 }
 0x1a9   :  { %1618 = vmatprep.mubr.bf16.mxu1 %v1385_v24 }
 0x1aa   :  { %1619 = vmatmul.mubr.bf16.vlgmr.msra.gmra.mrb[16].mxu1 %v1384_v26 }
 0x1ab   :  { %2099 = vmatpush3.bf16.msra.mxu1 %v2375_v25  ;;  %2114 = vmatprep.mubr.msk.bf16.mxu1 %vm2416_vm1, %v2415_v58 }
 0x1ac   :  { %2100 = vmatprep.subr.bf16.mxu1 %v2415_v58 }
 0x1af   :  { %2101 = vmatpush3.bf16.msra.mxu1 %v2376_v27 }
 0x1b0   :  { %2102 = vmatprep.subr.bf16.mxu1 %v2415_v58 }
 0x1b3   :  { %2103 = vmatpush3.bf16.msra.mxu1 %v2377_v28 }
 0x1b4   :  { %2104 = vmatprep.subr.bf16.mxu1 %v2415_v58 }
 0x1b7   :  { %2105 = vmatpush3.bf16.msra.mxu1 %v2378_v29 }
 0x1b8   :  { %2106 = vmatprep.subr.bf16.mxu1 %v2415_v58 }
 0x1bb   :  { %2107 = vmatpush3.bf16.msra.mxu1 %v2379_v30 }
 0x1bc   :  { %2108 = vmatprep.subr.bf16.mxu1 %v2415_v58 }
 0x1bf   :  { %2109 = vmatpush3.bf16.msra.mxu1 %v2380_v31 }
 0x1c0   :  { %2110 = vmatprep.subr.bf16.mxu1 %v2415_v58 }
 0x1c3   :  { %2111 = vmatpush3.bf16.msra.mxu1 %v2381_v32 }
 0x1c4   :  { %2112 = vmatprep.subr.bf16.mxu1 %v2415_v58 }
 0x1c7   :  { %2113 = vmatpush3.bf16.msra.mxu1 %v2382_v33 }
 0x1c8   :  { %2118 = vmatprep.subr.bf16.mxu1 %v2415_v58 }
 0x1ca   :  { %2115 = vmatmul.mubr.bf16.vlgmr.msra.gmra.mrb[20].mxu1 %v1386_v35 }
 0x1cb   :  { %2134 = vmatprep.mubr.msk.bf16.mxu1 %vm2416_vm1, %v2415_v58  ;;  %2119 = vmatpush3.bf16.msra.mxu1 %v2383_v36 }
 0x1cc   :  { %2120 = vmatprep.subr.bf16.mxu1 %v2415_v58 }
 0x1cf   :  { %2121 = vmatpush3.bf16.msra.mxu1 %v2384_v37 }
 0x1d0   :  { %2122 = vmatprep.subr.bf16.mxu1 %v2415_v58 }
 0x1d3   :  { %2123 = vmatpush3.bf16.msra.mxu1 %v2385_v38 }
 0x1d4   :  { %2124 = vmatprep.subr.bf16.mxu1 %v2415_v58 }
 0x1d7   :  { %2125 = vmatpush3.bf16.msra.mxu1 %v2386_v39 }
 0x1d8   :  { %2126 = vmatprep.subr.bf16.mxu1 %v2415_v58 }
 0x1db   :  { %2127 = vmatpush3.bf16.msra.mxu1 %v2387_v40 }
 0x1dc   :  { %2128 = vmatprep.subr.bf16.mxu1 %v2415_v58 }
 0x1df   :  { %2129 = vmatpush3.bf16.msra.mxu1 %v2388_v41 }
 0x1e0   :  { %2130 = vmatprep.subr.bf16.mxu1 %v2415_v58 }
 0x1e3   :  { %2131 = vmatpush3.bf16.msra.mxu1 %v2389_v42 }
 0x1e4   :  { %2132 = vmatprep.subr.bf16.mxu1 %v2415_v58 }
 0x1e7   :  { %2133 = vmatpush3.bf16.msra.mxu1 %v2390_v43 }
 0x27d   :  { %v2068_v44 = vpop.f32.mrb[16].mxu1 }
 0x27e   :  { %v2069_v45 = vpop.f32.mrb[17].mxu1 }
 0x27f   :  { %v2070_v46 = vadd.f32 %v2069_v45, %v2068_v44  ;;  %v2071_v47 = vpop.f32.mrb[18].mxu1 }
 0x280   :  { %v2072_v48 = vpop.f32.mrb[19].mxu1 }
 0x281   :  { %v1621_v50 = vadd.f32 %v2070_v46, %v1950_v49 }
 0x29d   :  { %v1660_v51 = vpop.f32.mrb[20].mxu1 }
 0x29e   :  { %v1661_v52 = vadd.f32 %v1660_v51, %v1621_v50  ;;  %v2116_v53 = vpop.f32.mrb[21].mxu1 }
 0x29f   :  { %v1663_v54 = vpop.f32.mrb[22].mxu1 }
 0x2a0   :  { %v1666_v58 = vmax.f32 %v1661_v52, 0.0  ;;  %v2117_v55 = vpop.f32.mrb[23].mxu1 }
 0x2a2   :  { %v1667_v56 = vpack.c.bf16 %v1666_v58, %v1666_v58 }
 0x2a4   :  { %2135 = vmatmul.mubr.bf16.vlgmr.msra.gmra.mrb[24].mxu1 %v1667_v56 }
 0x377   :  { %v1773_v59 = vpop.f32.mrb[24].mxu1 }
 0x378   :  { %v1774_v60 = vadd.f32 %v1975_v57, %v1773_v59  ;;  %v2136_v61 = vpop.f32.mrb[25].mxu1 }
 0x379   :  { %v1776_v62 = vpop.f32.mrb[26].mxu1 }
 0x37a   :  { %1779 = vst [vmem:[#allocation2] sm:$0xff] %v1774_v60  ;;  %v2137_v63 = vpop.f32.mrb[27].mxu1 }
 0x37b   :  { %2402 = shalt.err (!%p2399_p4)
}
 0x37c   :  { %s2403_s6 = scalar_lea.hbm %s3079_s7, 128 }
 0x37d   :  { %p2404_p5 = scmp.ne.s32.totalorder %s3079_s7, %s2403_s6  ;;  %p2407_p6 = scmp.lt.u32.totalorder %s2403_s6, %s3079_s7 }
 0x37f   :  { %p2409_p7 = pnand %p2407_p6, %p2404_p5 }
 0x381   :  { %2412 = shalt.err (!%p2409_p7)
}
 0x382   :  { %1789 = dma.vmem_to_hbm [thread:$0]  %s1787_s16, 128, %s3079_s7, [#allocation3]  }
 0x383   :  { %2413 = dma.done.wait [#allocation3], 128  }
 0x384   :  { %2414 = vsyncadd [#allocation3], 4294967168 }
 0x385   :  { %1793 = vsyncpa [#allocation3], 1 }

</bundles_post_ra>
